<compile_context>
chip_gen: v7x
topology: tpu7x:2x2x1
jax: 0.10.0
libtpu: 0.0.40
codegen_flags: <defaults>
</compile_context>

<pallas_src>
import jax
import jax.numpy as jnp
from jax.experimental import pallas as pl
from jax.experimental.pallas import tpu as pltpu

_MIB = 1024 * 1024
_VMEM_BUDGET_BYTES = 24 * _MIB    # tile-footprint budget (safe on v5e/v6e/v7x physical VMEM)
_VMEM_LIMIT_BYTES = 32 * _MIB     # passed as vmem_limit_bytes; headroom for Mosaic scratch
_LOGITS_TILE_BYTES = 4 * _MIB     # per-tile logits target (HBM-roofline knee is ~1 MiB)
_MIN_PALLAS_BYTES = 128 * 1024    # below this, the fused XLA path wins


def _classification_head_kernel(logits_ref, preds_ref, scores_ref):
    # logits_ref: [TB, C] tile in VMEM, preds_ref: [TB, 1] int32, scores_ref: [TB, C]
    x = logits_ref[...].astype(jnp.float32)
    tb, c = x.shape

    # Row max is shared between the argmax and the stable log-softmax.
    row_max = jnp.max(x, axis=-1, keepdims=True)                     # [TB, 1]

    # --- numerically stable log_softmax over the class axis ---
    shifted = x - row_max                                            # [TB, C]
    sum_exp = jnp.sum(jnp.exp(shifted), axis=-1, keepdims=True)      # [TB, 1]
    scores_ref[...] = (shifted - jnp.log(sum_exp)).astype(scores_ref.dtype)

    # --- argmax with first-index tie-breaking (same as torch.max / jnp.argmax) ---
    # shifted == 0.0 exactly iff x == row_max (f32), so reuse it for the tie mask.
    idx = jax.lax.broadcasted_iota(jnp.int32, (tb, c), dimension=1)  # [TB, C]
    masked_idx = jnp.where(shifted == 0.0, idx, jnp.int32(c))        # ties -> min index
    preds_ref[...] = jnp.min(masked_idx, axis=-1, keepdims=True)     # [TB, 1] int32


def _row_align(dtype):
    """Packed-sublane height: 8 rows for 4-byte, 16 for 2-byte, 32 for 1-byte dtypes."""
    return max(8, 32 // jnp.dtype(dtype).itemsize)


def _per_row_vmem_bytes(num_classes, in_itemsize, out_itemsize):
    # Double-buffered logits in + scores out tiles, plus ~6 C-wide f32/i32
    # temporaries materialized in the body (x, shifted, exp, iota, masked_idx,
    # cast result), plus per-row scalars (max / sum / pred).
    return (2 * num_classes * in_itemsize
            + 2 * num_classes * out_itemsize
            + 6 * num_classes * 4
            + 4 * 4)


def _pick_block_rows(batch, num_classes, in_itemsize, out_itemsize, row_align):
    """Bytes-based tile: fill the VMEM budget, cap the logits-tile DMA burst."""
    per_row = _per_row_vmem_bytes(num_classes, in_itemsize, out_itemsize)
    tb_vmem = _VMEM_BUDGET_BYTES // max(per_row, 1)
    tb_dma = _LOGITS_TILE_BYTES // max(num_classes * in_itemsize, 1)
    tb = min(tb_vmem, tb_dma)
    if tb < row_align:
        return None  # even the minimum tile would not fit -> caller falls back
    b_ceil = pl.cdiv(batch, row_align) * row_align
    tb = min(tb, b_ceil)
    return max(row_align, (int(tb) // row_align) * row_align)


def classification_head_forward(logits, *, block_rows=None, use_pallas=None):
    """Pallas implementation of ClassificationHead.forward -> (preds, scores)."""
    B, C = logits.shape
    scores_dtype = logits.dtype
    in_itemsize = jnp.dtype(logits.dtype).itemsize
    out_itemsize = jnp.dtype(scores_dtype).itemsize
    align = _row_align(scores_dtype)

    if use_pallas is None:
        # A single-tile grid cannot pipeline; fused XLA wins on small heads.
        use_pallas = (B * C * in_itemsize) >= _MIN_PALLAS_BYTES

    tb = None
    if use_pallas:
        if block_rows is not None:
            tb = max(align, (int(block_rows) // align) * align)
        else:
            tb = _pick_block_rows(B, C, in_itemsize, out_itemsize, align)
        # TODO(synk): vocab-sized C that doesn't fit VMEM needs a second
        # "arbitrary" class-axis grid dimension with online max/logsumexp
        # accumulators; until then we fall back to the fused XLA path.
        if tb is None:
            use_pallas = False

    if not use_pallas:
        preds = jnp.argmax(logits, axis=-1).astype(jnp.int32)
        scores = jax.nn.log_softmax(logits.astype(jnp.float32), axis=-1).astype(scores_dtype)
        return preds, scores

    num_tiles = pl.cdiv(B, tb)

    cost = pl.CostEstimate(
        flops=5 * B * C,
        transcendentals=B * C + B,
        bytes_accessed=B * C * (in_itemsize + out_itemsize) + B * 4,
    )

    preds2d, scores = pl.pallas_call(
        _classification_head_kernel,
        grid=(num_tiles,),
        # TODO(synk): if a v7x trace shows exposed input DMA, sweep
        # pipeline_mode=pl.Buffered(3) on this spec.
        in_specs=[pl.BlockSpec((tb, C), lambda i: (i, 0))],
        out_specs=(
            pl.BlockSpec((tb, 1), lambda i: (i, 0)),
            pl.BlockSpec((tb, C), lambda i: (i, 0)),
        ),
        out_shape=(
            jax.ShapeDtypeStruct((B, 1), jnp.int32),
            jax.ShapeDtypeStruct((B, C), scores_dtype),
        ),
        # TODO(synk): confirm v7x actually splits the batch axis across its two
        # TensorCores; if the trace shows a single-TC roofline, switch to
        # pltpu.CORE_PARALLEL / an explicit core_map.
        compiler_params=pltpu.CompilerParams(
            dimension_semantics=(pltpu.PARALLEL,),
            vmem_limit_bytes=_VMEM_LIMIT_BYTES,
        ),
        cost_estimate=cost,
    )(logits)

    return preds2d[:, 0], scores


if __name__ == "__main__":
    key = jax.random.PRNGKey(0)
    k1, k2, k3 = jax.random.split(key, 3)

    # Case 1: Pallas path, tiled batch with a partial last tile (B % tb != 0).
    B, C = 20, 128
    logits = jax.random.normal(k1, (B, C), dtype=jnp.float32)
    preds, scores = classification_head_forward(logits, block_rows=8, use_pallas=True)
    jax.block_until_ready((preds, scores))
    ref_preds = jnp.argmax(logits, axis=-1).astype(jnp.int32)
    ref_scores = jax.nn.log_softmax(logits, axis=-1)
    assert preds.shape == (B,) and scores.shape == (B, C)
    assert jnp.array_equal(preds, ref_preds), "argmax mismatch (pallas, tiled)"
    assert jnp.allclose(scores, ref_scores, atol=1e-5, rtol=1e-5), "log_softmax mismatch (pallas, tiled)"

    # Case 2: bf16 logits -> bf16 scores writeback (f32 internal math), with a
    # partial last tile smaller than the bf16 packed-sublane height.
    logits_bf16 = jax.random.normal(k2, (24, 128), dtype=jnp.float32).astype(jnp.bfloat16)
    preds_b, scores_b = classification_head_forward(logits_bf16, block_rows=16, use_pallas=True)
    jax.block_until_ready((preds_b, scores_b))
    ref_preds_b = jnp.argmax(logits_bf16, axis=-1).astype(jnp.int32)
    ref_scores_b = jax.nn.log_softmax(logits_bf16.astype(jnp.float32), axis=-1)
    assert scores_b.dtype == jnp.bfloat16
    assert jnp.array_equal(preds_b, ref_preds_b), "argmax mismatch (pallas, bf16)"
    assert jnp.allclose(scores_b.astype(jnp.float32), ref_scores_b, atol=3e-2, rtol=1e-2), \
        "log_softmax mismatch (pallas, bf16)"

    # Case 3: class count that is not a multiple of 128 (lane-padding masking in
    # the max / sum / min lane reductions).
    logits_odd = jax.random.normal(k3, (16, 130), dtype=jnp.float32)
    preds_o, scores_o = classification_head_forward(logits_odd, use_pallas=True)
    jax.block_until_ready((preds_o, scores_o))
    assert jnp.array_equal(preds_o, jnp.argmax(logits_odd, axis=-1).astype(jnp.int32)), \
        "argmax mismatch (pallas, C=130)"
    assert jnp.allclose(scores_o, jax.nn.log_softmax(logits_odd, axis=-1), atol=1e-5, rtol=1e-5), \
        "log_softmax mismatch (pallas, C=130)"

    # Case 4: tiny shape auto-dispatches to plain JAX (no kernel/DMA overhead).
    tiny = jax.random.normal(key, (4, 16), dtype=jnp.float32)
    preds_t, scores_t = classification_head_forward(tiny)
    jax.block_until_ready((preds_t, scores_t))
    assert jnp.array_equal(preds_t, jnp.argmax(tiny, axis=-1).astype(jnp.int32))
    assert jnp.allclose(scores_t, jax.nn.log_softmax(tiny, axis=-1), atol=1e-5, rtol=1e-5)

    print("KERNEL_OK")
</pallas_src>

<mosaic_0001>
module attributes {stable_mosaic.version = 11 : i64} {
  func.func @_classification_head_kernel(%arg0: i32, %arg1: memref<8x128xf32, #tpu.memory_space<vmem>>, %arg2: memref<8x1xi32, #tpu.memory_space<vmem>>, %arg3: memref<8x128xf32, #tpu.memory_space<vmem>>) attributes {dimension_semantics = [#tpu.dimension_semantics<parallel>], iteration_bounds = array<i64: 3>, scalar_prefetch = 0 : i64, scratch_operands = 0 : i64, tpu.core_type = #tpu.core_type<tc>, window_params = [{transform_indices = @transform_0, window_bounds = array<i64: 8, 128>}, {transform_indices = @transform_1, window_bounds = array<i64: 8, 1>}, {transform_indices = @transform_2, window_bounds = array<i64: 8, 128>}]} {
    %c0 = arith.constant 0 : index
    %c0_0 = arith.constant 0 : index
    %0 = vector.load %arg1[%c0, %c0_0] : memref<8x128xf32, #tpu.memory_space<vmem>>, vector<8x128xf32>
    %cst = arith.constant dense<0xFF800000> : vector<8xf32>
    %1 = vector.multi_reduction <maximumf>, %0, %cst [1] : vector<8x128xf32> to vector<8xf32>
    %2 = vector.shape_cast %1 : vector<8xf32> to vector<8x1xf32>
    %3 = vector.broadcast %2 : vector<8x1xf32> to vector<8x128xf32>
    %4 = arith.subf %0, %3 : vector<8x128xf32>
    %5 = math.exp %4 : vector<8x128xf32>
    %cst_1 = arith.constant dense<0.000000e+00> : vector<8xf32>
    %6 = vector.multi_reduction <add>, %5, %cst_1 [1] : vector<8x128xf32> to vector<8xf32>
    %7 = vector.shape_cast %6 : vector<8xf32> to vector<8x1xf32>
    %8 = math.log %7 : vector<8x1xf32>
    %9 = vector.broadcast %8 : vector<8x1xf32> to vector<8x128xf32>
    %10 = arith.subf %4, %9 : vector<8x128xf32>
    %c0_2 = arith.constant 0 : index
    %c0_3 = arith.constant 0 : index
    %11 = vector.load %arg3[%c0_2, %c0_3] : memref<8x128xf32, #tpu.memory_space<vmem>>, vector<8x128xf32>
    tpu.vector_store %arg3[%c0_2, %c0_3], %10 {strides = array<i32>} : memref<8x128xf32, #tpu.memory_space<vmem>>, vector<8x128xf32>,
    %12 = tpu.iota {dimensions = array<i32: 1>} : vector<8x128xi32>
    %cst_4 = arith.constant 0.000000e+00 : f32
    %13 = vector.broadcast %cst_4 : f32 to vector<8x128xf32>
    %14 = arith.cmpf oeq, %4, %13 : vector<8x128xf32>
    %c128_i32 = arith.constant 128 : i32
    %15 = vector.broadcast %c128_i32 : i32 to vector<8x128xi32>
    %16 = arith.select %14, %12, %15 : vector<8x128xi1>, vector<8x128xi32>
    %cst_5 = arith.constant dense<2147483647> : vector<8xi32>
    %17 = vector.multi_reduction <minsi>, %16, %cst_5 [1] : vector<8x128xi32> to vector<8xi32>
    %18 = vector.shape_cast %17 : vector<8xi32> to vector<8x1xi32>
    %c0_6 = arith.constant 0 : index
    %c0_7 = arith.constant 0 : index
    %19 = vector.load %arg2[%c0_6, %c0_7] : memref<8x1xi32, #tpu.memory_space<vmem>>, vector<8x1xi32>
    tpu.vector_store %arg2[%c0_6, %c0_7], %18 {strides = array<i32>} : memref<8x1xi32, #tpu.memory_space<vmem>>, vector<8x1xi32>,
    return
  }
  func.func @transform_0(%arg0: i32) -> (i32, i32) {
    %c0_i32 = arith.constant 0 : i32
    %c0_i32_0 = arith.constant 0 : i32
    return %arg0, %c0_i32 : i32, i32
  }
  func.func @transform_1(%arg0: i32) -> (i32, i32) {
    %c0_i32 = arith.constant 0 : i32
    %c0_i32_0 = arith.constant 0 : i32
    return %arg0, %c0_i32 : i32, i32
  }
  func.func @transform_2(%arg0: i32) -> (i32, i32) {
    %c0_i32 = arith.constant 0 : i32
    %c0_i32_0 = arith.constant 0 : i32
    return %arg0, %c0_i32 : i32, i32
  }
}

</mosaic_0001>

<bundles_post_ra>
// kernel: tpu_custom_call.1
= control target key start
LH: loop header
LB: loop body
LE: loop exit
PB: predicated region body
PF: predicated region fallthrough
CT: control target
= control target key end

     0   :  { %8 = vsyncpa [#allocation3], 0  ;;  %s663_s0 = inlined_call_operand.hbm [shape: f32[20,128], index: 0, kind: input, shape index: {}]   ;;  %s664_s1 = inlined_call_operand.vmem [shape: s32[20,1], index: 1, kind: output, shape index: {0}]   ;;  %s665_s2 = inlined_call_operand.hbm [shape: f32[20,128], index: 2, kind: output, shape index: {1}]  }
   0x1   :  { %10 = vsyncpa [#allocation3 + $0x1], 0 }
   0x2   :  { %11 = vsyncpa [#allocation4], 0 }
   0x3   :  { %13 = vsyncpa [#allocation4 + $0x1], 0  ;;  %s495_s9 = smov 0   ;;  %s497_s10 = smov 0  }
   0x4   :  { %s499_s11 = smov 0   ;;  %s501_s12 = smov 0  }
   0x5 LB: > { %s516_s13 = sadd.s32 4294967295, %s476_s12   ;;  %s317_s14 = sadd.s32 4294967294, %s476_s12   ;;  %s476_s12 = sphi %s501_s12, %s679_s12   ;;  %s472_s11 = sphi %s499_s11, %s678_s11   ;;  %s468_s10 = sphi %s497_s10, %s677_s10   ;;  %s464_s9 = sphi %s495_s9, %s676_s9  }
   0x6   : > { %s520_s15 = sadd.s32 1, %s476_s12   ;;  %s26_s16 = sadd.s32 1, %s472_s11 }
   0x7   : > { %s23_s17 = ssub.s32 %s476_s12, %s520_s15  ;;  %p33_p0 = scmp.ne.s32.totalorder %s472_s11, %s468_s10 }
   0x8   : > { %p24_p1 = scmp.eq.s32.totalorder %s23_s17, 0  ;;  %p34_p2 = scmp.eq.s32.totalorder %s476_s12, 0 }
   0x9   : > { %p39_p3 = scmp.ne.s32.totalorder %s468_s10, %s464_s9  ;;  %p40_p4 = scmp.eq.s32.totalorder %s516_s13, 0 }
   0xa   : > { %s532_s18 = scalar_select %p24_p1, %s472_s11, %s26_s16  }
   0xb   : > { %p534_p5 = por %p34_p2, %p33_p0  ;;  %p538_p6 = por %p40_p4, %p39_p3 }
   0xc   : > { %p89_p7 = scmp.eq.s32.totalorder %s516_s13, 2  ;;  %p95_p8 = scmp.eq.s32.totalorder %s317_s14, 2 }
   0xd   : > { %p342_p9 = scmp.lt.s32.totalorder %s476_s12, 3  ;;  %s115_s23 = sand.u32 1, %s472_s11  }
   0xe   : > { %p544_p10 = por %p89_p7, %p33_p0  ;;  %p548_p11 = por %p95_p8, %p39_p3 }
   0xf   : > { %s321_s24 = sshll.u32 %s476_s12, 7  ;;  %s320_s25 = sshll.u32 %s115_s23, 3 }
  0x10   : > { %s669_s21 = scalar_select %p544_p10, 1, 0 }
  0x11   : > { %s670_s22 = scalar_select %p548_p11, 1, 0 }
  0x12   : > { %s557_s28 = scalar_lea.hbm %s663_s0, %s321_s24  ;;  %s119_s29 = scalar_lea.vmem [#allocation2], %s320_s25 }
  0x13   : > { %s126_s30 = sshll.u32 %s119_s29, 4  ;;  %p561_p12 = pnand %p342_p9, %p534_p5  ;;  %s565_s30 = int_to_ptr.vmem [resolvable:$true] %s126_s30 }
  0x14   : > { %s116_s4 = scalar_lea.sflag [#allocation3], %s115_s23  ;;  %s380_s5 = scalar_lea.hbm %s557_s28, 128 }
  0x15   : > { %p381_p1 = scmp.ne.s32.totalorder %s557_s28, %s380_s5  ;;  %p382_p2 = pneg %p561_p12 }
  0x16   : > { %s385_s8 = scalar_lea.hbm %s663_s0, 384  ;;  %p386_p5 = scmp.lt.u32.totalorder %s557_s28, %s663_s0 }
  0x17   : > { %p383_p3 = pnand %p382_p2, %p381_p1  ;;  %p387_p7 = scmp.lt.u32.totalorder %s385_s8, %s380_s5 }
  0x18   : > { %p389_p9 = scmp.lt.u32.totalorder %s380_s5, %s557_s28 }
  0x19   : > { %p384_p4 = pneg %p383_p3  ;;  %p388_p8 = por %p387_p7, %p386_p5 }
  0x1b   : > { %p390_p13 = por %p389_p9, %p388_p8 }
  0x1d   : > { %p391_p0 = pnand %p390_p13, %p384_p4 }
  0x1f   : > { %394 = shalt.err (!%p391_p0)
}
  0x20   : > { %s395_s17 = scalar_lea.vmem %s565_s30, 128  ;;  %s478_s19 = smov [#allocation2]  }
  0x21   : > { %p396_p1 = scmp.ne.s32.totalorder %s565_s30, %s395_s17  ;;  %s400_s23 = sshll.u32 %s478_s19, 4  ;;  %s401_s23 = int_to_ptr.vmem [resolvable:$false] %s400_s23 }
  0x22   : > { %s402_s24 = scalar_lea.vmem %s401_s23, 256  ;;  %p403_p10 = scmp.lt.s32.totalorder %s565_s30, %s401_s23 }
  0x23   : > { %p398_p3 = pnand %p396_p1, %p382_p2  ;;  %p404_p5 = scmp.lt.s32.totalorder %s402_s24, %s395_s17 }
  0x25   : > { %p399_p11 = pneg %p398_p3  ;;  %p405_p7 = por %p404_p5, %p403_p10 }
  0x27   : > { %p406_p8 = pnand %p405_p7, %p399_p11 }
  0x29   : > { %409 = shalt.err (!%p406_p8)
}
  0x2a   : > { %337 = dma.hbm_to_vmem [thread:$0]  (!%p561_p12), %s557_s28, 128, %s565_s30, %s116_s4  }
  0x2b   : > { %p672_p13 = scmp.lt.s32.totalorder %s476_s12, 4  ;;  %p673_p0 = scmp.ge.s32.totalorder %s476_s12, 1 }
  0x2d   : > { %p132_p2 = pnand %p673_p0, %p672_p13 }
  0x2e   : > { %s599_s25 = sand.u32 (!%p132_p2), 1, %s468_s10  }
  0x2f   : > { %135 = sbr.rel (%p132_p2) target bundleno = 497 (0x1f1), region = 24  ;;  %s323_s26 = sshll.u32 (!%p132_p2), %s599_s25, 3 }
  0x30   : > { %s138_s27 = scalar_lea.sflag (!%p132_p2), [#allocation3], %s599_s25  ;;  %s141_s29 = scalar_lea.vmem (!%p132_p2), [#allocation2], %s323_s26 }
  0x36   : > { %455 = dma.done.wait (%p538_p6), %s138_s27, 128  }
  0x37   : > { %457 = vsyncadd (%p538_p6), %s138_s27, 4294967168  ;;  %v170_v0 = vld [vmem:[%s141_s29] sm:$0xff]  ;;  %v182_v1 = vlaneseq  ;;  %s327_s20 = sshll.u32 %s516_s13, 7  ;;  %s165_s28 = scalar_lea.vmem [#allocation5], %s323_s26 }
  0x38   : > { %171 = vmax.xlane.f32.xlu0 %v170_v0  ;;  %s223_s30 = sshll.u32 %s165_s28, 4  ;;  %s615_s5 = scalar_lea.hbm %s665_s2, %s327_s20  ;;  %s617_s30 = int_to_ptr.vmem [resolvable:$true] %s223_s30 }
  0x39   : > { %v183_v3 = vand.u32 127, %v182_v1  ;;  %s207_s6 = scalar_lea.sflag [#allocation4], %s599_s25  ;;  %s410_s7 = scalar_lea.vmem %s617_s30, 128 }
  0x3a   : > { %p411_p6 = scmp.ne.s32.totalorder %s617_s30, %s410_s7  ;;  %p674_p10 = scmp.ne.s32.totalorder %s669_s21, 0 }
  0x3b   : > { %s479_s8 = smov [#allocation5]  }
  0x3c   : > { %p412_p11 = pnand %p411_p6, %p674_p10  ;;  %s414_s14 = sshll.u32 %s479_s8, 4  ;;  %s415_s14 = int_to_ptr.vmem [resolvable:$false] %s414_s14 }
  0x3d   : > { %s416_s16 = scalar_lea.vmem %s415_s14, 256  ;;  %p417_p4 = scmp.lt.s32.totalorder %s617_s30, %s415_s14 }
  0x3e   : > { %p413_p12 = pneg %p412_p11  ;;  %p418_p9 = scmp.lt.s32.totalorder %s416_s16, %s410_s7 }
  0x40   : > { %p419_p1 = por %p418_p9, %p417_p4 }
  0x42   : > { %p420_p3 = pnand %p419_p1, %p413_p12 }
  0xc5   : > { %v172_v2 = vpop.xlane.xlu0 %171 }
  0xc6   : > { %v173_v4 = vsub.f32 %v170_v0, %v172_v2 }
  0xc8   : > { %vm184_vm0 = vcmp.eq.f32.partialorder %v173_v4, 0.0  ;;  %v174_v5 = vmul.f32 1.442695, %v173_v4 }
  0xc9   : > { %v185_v6 = vsel %vm184_vm0, %v183_v3, 128 }
  0xca   : > { %v187_v7 = vshra.s32 %v185_v6, 16  ;;  %376 = vpow2.f32 %v174_v5  ;;  %v186_v10 = vand.u32 65535, %v185_v6 }
  0xcc   : > { %v189_v8 = vcvt.s32.f32 %v187_v7  ;;  %v188_v12 = vcvt.s32.f32 %v186_v10 }
  0xce   : > { %190 = vmin.xlane.f32.xlu0 %v189_v8 }
  0xd4   : > { %v377_v9 = vpop.eup %376 }
  0xd5   : > { %176 = vadd.xlane.f32.xlu1 %v377_v9 }
 0x15b   : > { %v191_v11 = vpop.xlane.xlu0 %190 }
 0x15c   : > { %vm192_vm1 = vcmp.eq.f32.partialorder %v189_v8, %v191_v11 }
 0x15d   : > { %v193_v13 = vsel %vm192_vm1, %v188_v12, inf }
 0x15e   : > { %194 = vmin.xlane.f32.xlu1 %v193_v13 }
 0x162   : > { %v177_v14 = vpop.xlane.xlu1 %176 }
 0x163   : > { %378 = vlog2.f32 %v177_v14 }
 0x16d   : > { %v379_v15 = vpop.eup %378 }
 0x16e   : > { %v179_v16 = vmul.f32 0.6931472, %v379_v15 }
 0x170   : > { %v180_v17 = vsub.f32 %v173_v4, %v179_v16 }
 0x172   : > { %181 = vst [vmem:[%s165_s28] sm:$0xff] %v180_v17 }
 0x173   : > { %423 = shalt.err (!%p420_p3)
}
 0x174   : > { %s424_s17 = scalar_lea.hbm %s615_s5, 128  ;;  %s428_s24 = scalar_lea.hbm %s665_s2, 384 }
 0x175   : > { %p425_p5 = scmp.ne.s32.totalorder %s615_s5, %s424_s17  ;;  %p429_p13 = scmp.lt.u32.totalorder %s615_s5, %s665_s2 }
 0x176   : > { %p430_p0 = scmp.lt.u32.totalorder %s428_s24, %s424_s17  ;;  %p432_p6 = scmp.lt.u32.totalorder %s424_s17, %s615_s5 }
 0x177   : > { %p426_p7 = pnand %p425_p5, %p674_p10 }
 0x178   : > { %p431_p2 = por %p430_p0, %p429_p13 }
 0x179   : > { %p427_p8 = pneg %p426_p7 }
 0x17a   : > { %p433_p11 = por %p432_p6, %p431_p2 }
 0x17c   : > { %p434_p12 = pnand %p433_p11, %p427_p8 }
 0x17e   : > { %437 = shalt.err (!%p434_p12)
}
 0x17f   : > { %332 = dma.vmem_to_hbm [thread:$0]  (%p674_p10), %s617_s30, 128, %s615_s5, %s207_s6   ;;  %v197_v18 = vcvt.f32.s32 %v191_v11  ;;  %vm200_vm2 = vcmask 7168  }
 0x180   : > { %p166_p4 = scmp.lt.s32.totalorder %s516_s13, 2 }
 0x181   : > { %v198_v20 = vshll.u32 %v197_v18, 16 }
 0x182   : > { %s681_s13 = smov (!%p166_p4, %s516_s13), 2 }
 0x183   : > { %s325_s27 = sshll.u32 %s681_s13, 3 }
 0x184   : > { %s169_s28 = scalar_lea.vmem %s664_s1, %s325_s27 }
 0x1eb   : > { %v195_v19 = vpop.xlane.xlu1 %194 }
 0x1ec   : > { %v196_v21 = vcvt.f32.s32 %v195_v19 }
 0x1ee   : > { %v199_v22 = vadd.s32 %v198_v20, %v196_v21 }
 0x1f0   : > { %201 = vst.msk [vmem:[%s169_s28] sm:$0xff] %vm200_vm2, %v199_v22 }
 0x1f1 PF: > { %p343_p9 = scmp.ge.s32.totalorder %s476_s12, 2  ;;  %s242_s21 = sand.u32 1, %s464_s9  }
 0x1f2   : > { %p675_p10 = scmp.ne.s32.totalorder %s670_s22, 0  ;;  %s243_s30 = scalar_lea.sflag [#allocation4], %s242_s21 }
 0x1f4   : > { %p339_p1 = pnand %p343_p9, %p675_p10 }
 0x1f6   : > { %459 = dma.done.wait (!%p339_p1), %s243_s30, 128  }
 0x1f7   : > { %461 = vsyncadd (!%p339_p1), %s243_s30, 4294967168  ;;  %p16_p3 = scmp.ge.s32.totalorder %s520_s15, 5   ;;  %s676_s9 = smov %s468_s10 }
 0x1f8   : > { %s677_s10 = smov %s472_s11  ;;  %s678_s11 = smov %s532_s18 }
 0x1f9   : > { %s679_s12 = smov %s520_s15  ;;  %18 = sbr.rel (!%p16_p3) target bundleno = 5 (0x5), region = 81 }
 0x200   :  { %248 = vsyncpa [#allocation3], 1 }
 0x201   :  { %250 = vsyncpa [#allocation3 + $0x1], 1 }
 0x202   :  { %251 = vsyncpa [#allocation4], 1 }
 0x203   :  { %253 = vsyncpa [#allocation4 + $0x1], 1 }

</bundles_post_ra>
